<compile_context>
chip_gen: v6e
topology: v6e:2x2x1
jax: 0.10.0
libtpu: 0.0.40
codegen_flags: <defaults>
</compile_context>

<pallas_src>
import functools

import jax
import jax.numpy as jnp
from jax import lax
from jax.experimental import pallas as pl
from jax.experimental.pallas import tpu as pltpu

LN_EPS = 1e-5       # nn.LayerNorm default eps
NORM_EPS = 1e-12    # F.normalize default eps


def _round_up(x, m):
    return ((x + m - 1) // m) * m


def _choose_tiles(B, C, HW, x_itemsize, buf_budget=8 * 1024 * 1024):
    """Pick (TB, B_pad, THW, HW_pad) so one x block stays within buf_budget."""
    # spatial tile (lane axis): multiple of 128, at most 512
    thw = 128
    for cand in (512, 256, 128):
        if cand <= _round_up(HW, 128) and 8 * C * cand * x_itemsize <= buf_budget:
            thw = cand
            break
    hw_pad = _round_up(HW, thw)
    # batch tile: multiple of 8, as large as the per-buffer budget allows (cap 256)
    tb_fit = max(8, (buf_budget // max(1, C * thw * x_itemsize)) // 8 * 8)
    tb = max(8, min(256, _round_up(B, 8), tb_fit))
    b_pad = _round_up(B, tb)
    return tb, b_pad, thw, hw_pad


def _embed_kernel(x_ref, wt_ref, out_ref, acc_ref, *, inv_hw):
    # x_ref:  (TB, C, THW)  current spatial slab of the batch tile
    # wt_ref: (C, D_pad)    remap weight (transposed, lane-padded), resident
    # out_ref:(TB, D_pad)
    # acc_ref:(TB, C) f32   pooled-sum accumulator (persists across spatial steps)
    s = pl.program_id(1)

    @pl.when(s == 0)
    def _init():
        acc_ref[...] = jnp.zeros_like(acc_ref)

    # 1) accumulate the spatial SUM for the average pool (always in f32)
    acc_ref[...] += jnp.sum(x_ref[...].astype(jnp.float32), axis=-1)

    @pl.when(s == pl.num_programs(1) - 1)
    def _finalize():
        pooled = acc_ref[...] * inv_hw                                 # true mean (TB, C)

        # 2) LayerNorm over channels, no affine, biased variance (torch semantics)
        mu = jnp.mean(pooled, axis=-1, keepdims=True)
        centered = pooled - mu
        var = jnp.mean(centered * centered, axis=-1, keepdims=True)
        ln = centered * lax.rsqrt(var + LN_EPS)                        # (TB, C)

        # 3) remap on the MXU: (TB, C) @ (C, D_pad)
        y = jnp.dot(ln, wt_ref[...], preferred_element_type=jnp.float32)

        # 4) L2-normalize rows: 1/max(||y||, eps) == rsqrt(max(||y||^2, eps^2))
        sq = jnp.sum(y * y, axis=-1, keepdims=True)
        inv_norm = lax.rsqrt(jnp.maximum(sq, NORM_EPS * NORM_EPS))
        out_ref[...] = (y * inv_norm).astype(out_ref.dtype)


def prepare_remap_weight(remap_weight, input_dim=None):
    """One-time weight prep — call OUTSIDE the per-step hot path.

    Takes the PyTorch Linear weight (out_features D, in_features C), or None for
    the identity remap, and returns a (C, D_pad) f32 array with D zero-padded to
    a multiple of 128 (lane-dense kernel output)."""
    if remap_weight is None:
        remap_weight = jnp.eye(input_dim, dtype=jnp.float32)
    D, C = remap_weight.shape
    d_pad = _round_up(D, 128)
    w_t = jnp.transpose(remap_weight).astype(jnp.float32)      # (C, D)
    return jnp.pad(w_t, ((0, 0), (0, d_pad - D)))               # (C, D_pad)


def embedded_feature_wrapper(x_nchw, remap_weight_prepared, output_dim,
                             *, x_compute_dtype=None):
    """x_nchw: (B, C, H, W); remap_weight_prepared: output of prepare_remap_weight."""
    B, C, H, W = x_nchw.shape
    HW = H * W
    Cw, d_pad = remap_weight_prepared.shape
    assert Cw == C and d_pad % 128 == 0 and output_dim <= d_pad

    x_dtype = jnp.dtype(x_compute_dtype) if x_compute_dtype is not None else jnp.dtype(jnp.float32)
    x_flat = x_nchw.reshape(B, C, HW).astype(x_dtype)

    tb, b_pad, thw, hw_pad = _choose_tiles(B, C, HW, x_dtype.itemsize)

    # Zero padding: padded spatial columns add 0 to the pooled SUM (the kernel
    # divides by the true H*W); padded batch rows are sliced off below.
    x_p = jnp.pad(x_flat, ((0, b_pad - B), (0, 0), (0, hw_pad - HW)))

    nb, ns = b_pad // tb, hw_pad // thw

    # Rough VMEM need: double-buffered x block + resident weight + out + scratch.
    need = (2 * tb * C * thw * x_dtype.itemsize + 2 * C * d_pad * 4
            + 2 * tb * d_pad * 4 + tb * C * 4)
    vmem_limit = int(min(max(need * 3 // 2, 32 * 1024 * 1024), 56 * 1024 * 1024))

    kernel = functools.partial(_embed_kernel, inv_hw=1.0 / float(HW))

    out_pad = pl.pallas_call(
        kernel,
        out_shape=jax.ShapeDtypeStruct((b_pad, d_pad), jnp.float32),
        grid_spec=pltpu.PrefetchScalarGridSpec(
            num_scalar_prefetch=0,
            grid=(nb, ns),                                   # reduction axis last
            in_specs=[
                pl.BlockSpec((tb, C, thw), lambda b, s: (b, 0, s)),
                pl.BlockSpec((C, d_pad), lambda b, s: (0, 0)),   # resident weight
            ],
            out_specs=pl.BlockSpec((tb, d_pad), lambda b, s: (b, 0)),
            scratch_shapes=[pltpu.VMEM((tb, C), jnp.float32)],
        ),
        compiler_params=pltpu.CompilerParams(
            dimension_semantics=("parallel", "arbitrary"),
            vmem_limit_bytes=vmem_limit,
        ),
    )(x_p, remap_weight_prepared)

    return out_pad[:B, :output_dim]


def _reference(x_nchw, remap_weight):
    # pure-JAX reference matching the PyTorch module
    pooled = x_nchw.mean(axis=(2, 3))                                   # (B, C)
    mean = pooled.mean(axis=-1, keepdims=True)
    var = ((pooled - mean) ** 2).mean(axis=-1, keepdims=True)
    ln = (pooled - mean) / jnp.sqrt(var + LN_EPS)
    y = ln @ remap_weight.T
    norm = jnp.maximum(jnp.sqrt(jnp.sum(y * y, axis=-1, keepdims=True)), NORM_EPS)
    return y / norm


if __name__ == "__main__":
    # Small shapes: batch=2, input_dim (channels)=4, spatial=16x16, output_dim=8.
    B, C, H, W, D = 2, 4, 16, 16, 8

    key = jax.random.PRNGKey(0)
    kx, kw = jax.random.split(key)
    x = jax.random.normal(kx, (B, C, H, W), dtype=jnp.float32)
    # Deterministic init of the Linear(input_dim, output_dim, bias=False) weight,
    # PyTorch layout (out_features, in_features).
    bound = 1.0 / (C ** 0.5)
    remap_w = jax.random.uniform(kw, (D, C), minval=-bound, maxval=bound,
                                 dtype=jnp.float32)

    # One-time weight prep (transpose + lane pad), hoisted out of the hot path.
    w_prep = jax.block_until_ready(prepare_remap_weight(remap_w))

    out = embedded_feature_wrapper(x, w_prep, output_dim=D)
    out = jax.block_until_ready(out)

    ref = _reference(x, remap_w)
    assert out.shape == (B, D)
    assert bool(jnp.allclose(out, ref, atol=1e-5, rtol=1e-4)), (
        f"max abs err {float(jnp.max(jnp.abs(out - ref)))}")

    print("KERNEL_OK")
</pallas_src>

<mosaic_0001>
module attributes {stable_mosaic.version = 11 : i64} {
  func.func @_embed_kernel(%arg0: i32, %arg1: i32, %arg2: memref<8x4x256xf32, #tpu.memory_space<vmem>>, %arg3: memref<4x128xf32, #tpu.memory_space<vmem>>, %arg4: memref<8x128xf32, #tpu.memory_space<vmem>>, %arg5: memref<8x4xf32, #tpu.memory_space<vmem>>) attributes {dimension_semantics = [#tpu.dimension_semantics<parallel>, #tpu.dimension_semantics<arbitrary>], iteration_bounds = array<i64: 1, 1>, scalar_prefetch = 0 : i64, scratch_operands = 1 : i64, tpu.core_type = #tpu.core_type<tc>, window_params = [{transform_indices = @transform_0, window_bounds = array<i64: 8, 4, 256>}, {pipeline_mode = #tpu.pipeline_mode<synchronous>, transform_indices = @transform_1, window_bounds = array<i64: 4, 128>}, {transform_indices = @transform_2, window_bounds = array<i64: 8, 128>}]} {
    %c0_i32 = arith.constant 0 : i32
    %0 = arith.cmpi eq, %arg1, %c0_i32 : i32
    %1 = arith.extui %0 : i1 to i32
    %c0_i32_0 = arith.constant 0 : i32
    %2 = arith.cmpi ne, %1, %c0_i32_0 : i32
    scf.if %2 {
      %cst_9 = arith.constant 0.000000e+00 : f32
      %11 = vector.broadcast %cst_9 : f32 to vector<8x4xf32>
      %c0_10 = arith.constant 0 : index
      %c0_11 = arith.constant 0 : index
      %12 = vector.load %arg5[%c0_10, %c0_11] : memref<8x4xf32, #tpu.memory_space<vmem>>, vector<8x4xf32>
      tpu.vector_store %arg5[%c0_10, %c0_11], %11 {strides = array<i32>} : memref<8x4xf32, #tpu.memory_space<vmem>>, vector<8x4xf32>,
    } else {
    }
    %c0 = arith.constant 0 : index
    %c0_1 = arith.constant 0 : index
    %3 = vector.load %arg5[%c0, %c0_1] : memref<8x4xf32, #tpu.memory_space<vmem>>, vector<8x4xf32>
    %c0_2 = arith.constant 0 : index
    %c0_3 = arith.constant 0 : index
    %c0_4 = arith.constant 0 : index
    %4 = vector.load %arg2[%c0_2, %c0_3, %c0_4] : memref<8x4x256xf32, #tpu.memory_space<vmem>>, vector<8x4x256xf32>
    %cst = arith.constant dense<0.000000e+00> : vector<8x4xf32>
    %5 = vector.multi_reduction <add>, %4, %cst [2] : vector<8x4x256xf32> to vector<8x4xf32>
    %6 = arith.addf %3, %5 : vector<8x4xf32>
    %c0_5 = arith.constant 0 : index
    %c0_6 = arith.constant 0 : index
    %7 = vector.load %arg5[%c0_5, %c0_6] : memref<8x4xf32, #tpu.memory_space<vmem>>, vector<8x4xf32>
    tpu.vector_store %arg5[%c0_5, %c0_6], %6 {strides = array<i32>} : memref<8x4xf32, #tpu.memory_space<vmem>>, vector<8x4xf32>,
    %c0_i32_7 = arith.constant 0 : i32
    %8 = arith.cmpi eq, %arg1, %c0_i32_7 : i32
    %9 = arith.extui %8 : i1 to i32
    %c0_i32_8 = arith.constant 0 : i32
    %10 = arith.cmpi ne, %9, %c0_i32_8 : i32
    scf.if %10 {
      %c0_9 = arith.constant 0 : index
      %c0_10 = arith.constant 0 : index
      %11 = vector.load %arg5[%c0_9, %c0_10] : memref<8x4xf32, #tpu.memory_space<vmem>>, vector<8x4xf32>
      %cst_11 = arith.constant 3.906250e-03 : f32
      %12 = vector.broadcast %cst_11 : f32 to vector<8x4xf32>
      %13 = arith.mulf %11, %12 : vector<8x4xf32>
      %cst_12 = arith.constant dense<0.000000e+00> : vector<8xf32>
      %14 = vector.multi_reduction <add>, %13, %cst_12 [1] : vector<8x4xf32> to vector<8xf32>
      %15 = vector.shape_cast %14 : vector<8xf32> to vector<8x1xf32>
      %cst_13 = arith.constant 4.000000e+00 : f32
      %16 = vector.broadcast %cst_13 : f32 to vector<8x1xf32>
      %17 = arith.divf %15, %16 : vector<8x1xf32>
      %18 = vector.broadcast %17 : vector<8x1xf32> to vector<8x4xf32>
      %19 = arith.subf %13, %18 : vector<8x4xf32>
      %20 = arith.mulf %19, %19 : vector<8x4xf32>
      %cst_14 = arith.constant dense<0.000000e+00> : vector<8xf32>
      %21 = vector.multi_reduction <add>, %20, %cst_14 [1] : vector<8x4xf32> to vector<8xf32>
      %22 = vector.shape_cast %21 : vector<8xf32> to vector<8x1xf32>
      %cst_15 = arith.constant 4.000000e+00 : f32
      %23 = vector.broadcast %cst_15 : f32 to vector<8x1xf32>
      %24 = arith.divf %22, %23 : vector<8x1xf32>
      %cst_16 = arith.constant 9.99999974E-6 : f32
      %25 = vector.broadcast %cst_16 : f32 to vector<8x1xf32>
      %26 = arith.addf %24, %25 : vector<8x1xf32>
      %27 = math.rsqrt %26 : vector<8x1xf32>
      %28 = vector.broadcast %27 : vector<8x1xf32> to vector<8x4xf32>
      %29 = arith.mulf %19, %28 : vector<8x4xf32>
      %c0_17 = arith.constant 0 : index
      %c0_18 = arith.constant 0 : index
      %30 = vector.load %arg3[%c0_17, %c0_18] : memref<4x128xf32, #tpu.memory_space<vmem>>, vector<4x128xf32>
      %cst_19 = arith.constant dense<0.000000e+00> : vector<8x128xf32>
      %31 = tpu.matmul %29, %30, %cst_19 {dimension_numbers = #tpu.dot_dimension_numbers<[1], [0], [0], [1], [0, 0, 1, 1], [], []>} : vector<8x4xf32>, vector<4x128xf32>, vector<8x128xf32> -> vector<8x128xf32>
      %32 = arith.mulf %31, %31 : vector<8x128xf32>
      %cst_20 = arith.constant dense<0.000000e+00> : vector<8xf32>
      %33 = vector.multi_reduction <add>, %32, %cst_20 [1] : vector<8x128xf32> to vector<8xf32>
      %34 = vector.shape_cast %33 : vector<8xf32> to vector<8x1xf32>
      %cst_21 = arith.constant 1.000000e-24 : f32
      %35 = vector.broadcast %cst_21 : f32 to vector<8x1xf32>
      %36 = arith.maximumf %34, %35 : vector<8x1xf32>
      %37 = math.rsqrt %36 : vector<8x1xf32>
      %38 = vector.broadcast %37 : vector<8x1xf32> to vector<8x128xf32>
      %39 = arith.mulf %31, %38 : vector<8x128xf32>
      %c0_22 = arith.constant 0 : index
      %c0_23 = arith.constant 0 : index
      %40 = vector.load %arg4[%c0_22, %c0_23] : memref<8x128xf32, #tpu.memory_space<vmem>>, vector<8x128xf32>
      tpu.vector_store %arg4[%c0_22, %c0_23], %39 {strides = array<i32>} : memref<8x128xf32, #tpu.memory_space<vmem>>, vector<8x128xf32>,
    } else {
    }
    return
  }
  func.func @transform_0(%arg0: i32, %arg1: i32) -> (i32, i32, i32) {
    %c0_i32 = arith.constant 0 : i32
    %c0_i32_0 = arith.constant 0 : i32
    return %arg0, %c0_i32, %arg1 : i32, i32, i32
  }
  func.func @transform_1(%arg0: i32, %arg1: i32) -> (i32, i32) {
    %c0_i32 = arith.constant 0 : i32
    %c0_i32_0 = arith.constant 0 : i32
    %c0_i32_1 = arith.constant 0 : i32
    return %c0_i32, %c0_i32_0 : i32, i32
  }
  func.func @transform_2(%arg0: i32, %arg1: i32) -> (i32, i32) {
    %c0_i32 = arith.constant 0 : i32
    %c0_i32_0 = arith.constant 0 : i32
    return %arg0, %c0_i32 : i32, i32
  }
}

</mosaic_0001>

<bundles_post_ra>
// kernel: tpu_custom_call.1
= control target key start
LH: loop header
LB: loop body
LE: loop exit
PB: predicated region body
PF: predicated region fallthrough
CT: control target
= control target key end

     0   :  { %7 = vsyncpa [#allocation4], 0  ;;  %s444_s0 = inlined_call_operand.hbm [shape: f32[8,4,256], index: 0, kind: input, shape index: {}]   ;;  %s445_s1 = inlined_call_operand.hbm [shape: f32[4,128], index: 1, kind: input, shape index: {}]   ;;  %s446_s2 = inlined_call_operand.hbm [shape: f32[8,128], index: 2, kind: output, shape index: {}]  }
   0x1   :  { %8 = vsyncpa [#allocation7], 0 }
   0x2   :  { %9 = vsyncpa [#allocation5], 0  ;;  %s391_s9 = smov [#allocation3]  }
   0x3   :  { %s15_s10 = sshll.u32 %s391_s9, 4  ;;  %s16_s10 = int_to_ptr.vmem [resolvable:$true] %s15_s10 }
   0x4   :  { %s333_s11 = scalar_lea.vmem %s16_s10, 1024  ;;  %p338_p1 = scmp.lt.s32.totalorder %s16_s10, %s16_s10 }
   0x5   :  { %p334_p0 = scmp.ne.s32.totalorder %s16_s10, %s333_s11  ;;  %p339_p2 = scmp.lt.s32.totalorder %s333_s11, %s333_s11 }
   0x7   :  { %p340_p3 = por %p339_p2, %p338_p1 }
   0x9   :  { %p341_p4 = pnand %p340_p3, %p334_p0 }
   0xb   :  { %344 = shalt.err (!%p341_p4)
}
   0xc   :  { %s392_s12 = smov 128   ;;  %s393_s13 = smov 8  }
   0xd   :  { %21 = dma.hbm_to_vmem [thread:$0]  %s444_s0, 1024, %s16_s10, [#allocation4], %s392_s12, %s392_s12, %s393_s13  }
   0xe   :  { %s394_s16 = smov [#allocation6]  }
   0xf   :  { %s28_s17 = sshll.u32 %s394_s16, 4  ;;  %s29_s17 = int_to_ptr.vmem [resolvable:$true] %s28_s17 }
  0x10   :  { %s353_s18 = scalar_lea.vmem %s29_s17, 64  ;;  %p358_p6 = scmp.lt.s32.totalorder %s29_s17, %s29_s17 }
  0x11   :  { %p354_p5 = scmp.ne.s32.totalorder %s29_s17, %s353_s18  ;;  %p359_p7 = scmp.lt.s32.totalorder %s353_s18, %s353_s18 }
  0x13   :  { %p360_p8 = por %p359_p7, %p358_p6 }
  0x15   :  { %p361_p9 = pnand %p360_p8, %p354_p5 }
  0x17   :  { %364 = shalt.err (!%p361_p9)
}
  0x18   :  { %31 = dma.hbm_to_vmem [thread:$0]  %s445_s1, 64, %s29_s17, [#allocation7]  }
  0x19   :  { %385 = dma.done.wait [#allocation4], 1024  }
  0x1a   :  { %386 = vsyncadd [#allocation4], 4294966272 }
  0x1b   :  { %387 = dma.done.wait [#allocation7], 64  }
  0x1c   :  { %388 = vsyncadd [#allocation7], 4294967232  ;;  %vm77_vm0 = vcmask 1043456   ;;  %v45_v0 = vld [vmem:[#allocation3] sm:$0xff]  ;;  %v47_v1 = vld [vmem:[#allocation3 + $0x10] sm:$0xff]  ;;  %vm42_vm1 = vcmask 31744   ;;  %v126_v41 = vlaneseq }
  0x1d   :  { %v46_v2 = vld [vmem:[#allocation3 + $0x8] sm:$0xff]  ;;  %v61_v3 = vcombine.high %v45_v0, %v45_v0  ;;  %v78_v4 = vsel %vm77_vm0, %v45_v0, 0.0  ;;  %v63_v5 = vcombine.high %v47_v1, %v47_v1  ;;  %v88_v6 = vsel %vm77_vm0, %v47_v1, 0.0  ;;  %v48_v7 = vld [vmem:[#allocation3 + $0x18] sm:$0xff]  ;;  %v49_v8 = vld [vmem:[#allocation3 + $0x20] sm:$0xff]  ;;  %s397_s0 = smov [#allocation8]  }
  0x1e   :  { %v62_v9 = vcombine.high %v46_v2, %v46_v2  ;;  %v83_v10 = vsel %vm77_vm0, %v46_v2, 0.0  ;;  %v64_v11 = vcombine.high %v48_v7, %v48_v7  ;;  %v50_v12 = vld [vmem:[#allocation3 + $0x28] sm:$0xff]  ;;  %v93_v15 = vsel %vm77_vm0, %v48_v7, 0.0  ;;  %v51_v21 = vld [vmem:[#allocation3 + $0x30] sm:$0xff]  ;;  %v52_v22 = vld [vmem:[#allocation3 + $0x38] sm:$0xff]  ;;  %s287_s1 = sshll.u32 %s397_s0, 4  ;;  %s288_s1 = int_to_ptr.vmem [resolvable:$true] %s287_s1 }
  0x1f   :  { %v79_v13 = vsel %vm77_vm0, %v61_v3, 0.0  ;;  %v89_v14 = vsel %vm77_vm0, %v63_v5, 0.0  ;;  %v65_v16 = vcombine.high %v49_v8, %v49_v8  ;;  %v66_v23 = vcombine.high %v50_v12, %v50_v12  ;;  %s365_s21 = scalar_lea.vmem %s288_s1, 128  ;;  %p370_p11 = scmp.lt.s32.totalorder %s288_s1, %s288_s1 }
  0x20   :  { %v80_v17 = vadd.f32 %v79_v13, %v78_v4  ;;  %v90_v18 = vadd.f32 %v89_v14, %v88_v6  ;;  %v84_v19 = vsel %vm77_vm0, %v62_v9, 0.0  ;;  %v94_v20 = vsel %vm77_vm0, %v64_v11, 0.0  ;;  %v197_v14 = vld [vmem:[#allocation6] sm:$0xf]  ;;  %p366_p10 = scmp.ne.s32.totalorder %s288_s1, %s365_s21  ;;  %p371_p12 = scmp.lt.s32.totalorder %s365_s21, %s365_s21 }
  0x21   :  { %v85_v24 = vadd.f32 %v84_v19, %v83_v10  ;;  %v95_v25 = vadd.f32 %v94_v20, %v93_v15  ;;  %v98_v26 = vsel %vm77_vm0, %v49_v8, 0.0  ;;  %v99_v27 = vsel %vm77_vm0, %v65_v16, 0.0 }
  0x22   :  { %81 = vadd.xlane.f32.xlu0 %v80_v17  ;;  %91 = vadd.xlane.f32.xlu1 %v90_v18  ;;  %v103_v28 = vsel %vm77_vm0, %v50_v12, 0.0  ;;  %v104_v29 = vsel %vm77_vm0, %v66_v23, 0.0  ;;  %v67_v30 = vcombine.high %v51_v21, %v51_v21  ;;  %v68_v31 = vcombine.high %v52_v22, %v52_v22  ;;  %p372_p13 = por %p371_p12, %p370_p11 }
  0x23   :  { %v100_v32 = vadd.f32 %v99_v27, %v98_v26  ;;  %v105_v33 = vadd.f32 %v104_v29, %v103_v28  ;;  %v108_v34 = vsel %vm77_vm0, %v51_v21, 0.0  ;;  %v113_v36 = vsel %vm77_vm0, %v52_v22, 0.0 }
  0x24   :  { %v109_v35 = vsel %vm77_vm0, %v67_v30, 0.0  ;;  %v114_v37 = vsel %vm77_vm0, %v68_v31, 0.0  ;;  %v395_v40 = vmov 0.0   ;;  %v127_v42 = vand.u32 127, %v126_v41  ;;  %p373_p0 = pnand %p372_p13, %p366_p10 }
  0x25   :  { %v110_v38 = vadd.f32 %v109_v35, %v108_v34  ;;  %v115_v39 = vadd.f32 %v114_v37, %v113_v36  ;;  %43 = vst.msk [vmem:[#allocation2] sm:$0xff] %vm42_vm1, %v395_v40  ;;  %301 = vmatprep.subr.mxu0 %v395_v40  ;;  %v129_v43 = vshrl.u32 %v126_v41, 7  ;;  %vm160_vm2 = vcmask 1041409  }
  0x26   :  { %86 = vadd.xlane.f32.xlu0 %v85_v24  ;;  %96 = vadd.xlane.f32.xlu1 %v95_v25  ;;  %vm162_vm3 = vcmask 1042434   ;;  %vm164_vm4 = vcmask 1043459   ;;  %vm166_vm5 = vcmask 1044484   ;;  %vm168_vm6 = vcmask 1045509  }
  0x27   :  { %v130_v46 = vsub.s32 %v127_v42, %v129_v43  ;;  %vm170_vm7 = vcmask 1046534   ;;  %vm172_vm8 = vcmask 1047559   ;;  %302 = vmatpush3.msk.msra.mxu0 %vm77_vm0, %v197_v14  ;;  %vm396_vm9 = vmmov 0  }
  0x28   :  { %303 = vmatprep.mubr.msk.f32.mxu0 %vm396_vm9, %v395_v40 }
  0x2a   :  { %101 = vadd.xlane.f32.xlu0 %v100_v32  ;;  %106 = vadd.xlane.f32.xlu1 %v105_v33 }
  0x2c   :  { %v44_v2 = vld [vmem:[#allocation2] sm:$0xff] }
  0x2e   :  { %111 = vadd.xlane.f32.xlu0 %v110_v38  ;;  %116 = vadd.xlane.f32.xlu1 %v115_v39 }
  0xab   :  { %v82_v44 = vpop.xlane.xlu0 %81  ;;  %v92_v45 = vpop.xlane.xlu1 %91 }
  0xac   :  { %v131_v49 = vrot.slane %v82_v44, %v130_v46  ;;  %v139_v52 = vrot.slane %v92_v45, %v130_v46 }
  0xaf   :  { %v87_v47 = vpop.xlane.xlu0 %86  ;;  %v97_v48 = vpop.xlane.xlu1 %96 }
  0xb0   :  { %v135_v50 = vrot.slane %v87_v47, %v130_v46  ;;  %v143_v51 = vrot.slane %v97_v48, %v130_v46 }
  0xb2   :  { %v161_v53 = vsel %vm160_vm2, %v135_v50, %v131_v49 }
  0xb3   :  { %v163_v54 = vsel %vm162_vm3, %v139_v52, %v161_v53  ;;  %v102_v55 = vpop.xlane.xlu0 %101  ;;  %v107_v56 = vpop.xlane.xlu1 %106 }
  0xb4   :  { %v165_v57 = vsel %vm164_vm4, %v143_v51, %v163_v54  ;;  %v147_v58 = vrot.slane %v102_v55, %v130_v46  ;;  %v151_v59 = vrot.slane %v107_v56, %v130_v46 }
  0xb6   :  { %v167_v60 = vsel %vm166_vm5, %v147_v58, %v165_v57 }
  0xb7   :  { %v112_v61 = vpop.xlane.xlu0 %111  ;;  %v117_v62 = vpop.xlane.xlu1 %116  ;;  %v169_v1 = vsel %vm168_vm6, %v151_v59, %v167_v60 }
  0xb8   :  { %v155_v63 = vrot.slane %v112_v61, %v130_v46  ;;  %v159_v0 = vrot.slane %v117_v62, %v130_v46 }
  0xba   :  { %v171_v3 = vsel %vm170_vm7, %v155_v63, %v169_v1 }
  0xbb   :  { %v173_v4 = vsel %vm172_vm8, %v159_v0, %v171_v3 }
  0xbc   :  { %v175_v5 = vadd.f32 %v173_v4, %v44_v2 }
  0xbe   :  { %177 = vst.msk [vmem:[#allocation2] sm:$0xff] %vm42_vm1, %v175_v5 }
  0xc5   :  { %v181_v6 = vld [vmem:[#allocation2] sm:$0xff] }
  0xc6   :  { %v182_v7 = vmul.f32 0.00390625, %v181_v6 }
  0xc8   :  { %v183_v8 = vsel %vm42_vm1, %v182_v7, 0.0 }
  0xc9   :  { %184 = vadd.xlane.f32.xlu0 %v183_v8 }
 0x152   :  { %v185_v9 = vpop.xlane.xlu0 %184 }
 0x153   :  { %v187_v10 = vmul.f32 0.25, %v185_v9 }
 0x155   :  { %v188_v11 = vsub.f32 %v182_v7, %v187_v10 }
 0x157   :  { %v189_v12 = vmul.f32 %v188_v11, %v188_v11 }
 0x159   :  { %v190_v13 = vsel %vm42_vm1, %v189_v12, 0.0 }
 0x15a   :  { %191 = vadd.xlane.f32.xlu1 %v190_v13 }
 0x1e3   :  { %v192_v15 = vpop.xlane.xlu1 %191 }
 0x1e4   :  { %v193_v16 = vmul.f32 0.25, %v192_v15 }
 0x1e6   :  { %v194_v17 = vadd.f32 1e-05, %v193_v16 }
 0x1e8   :  { %321 = vrsqrt.f32 %v194_v17 }
 0x1f5   :  { %v322_v18 = vpop.eup %321 }
 0x1f6   :  { %v196_v19 = vmul.f32 %v322_v18, %v188_v11 }
 0x1f8   :  { %304 = vmatmul.mubr.msk.f32.vlgmr.msra.gmra.mxu0 %vm42_vm1, %v196_v19 }
 0x2b8   :  { %v270_v20 = vpop.f32.mrf.mxu0 }
 0x2b9   :  { %v274_v21 = vmul.f32 %v270_v20, %v270_v20 }
 0x2ba   :  { %v305_v22 = vpop.f32.mrf.mxu0 }
 0x2bb   :  { %275 = vadd.xlane.f32.xlu0 %v274_v21 }
 0x344   :  { %v276_v23 = vpop.xlane.xlu0 %275 }
 0x345   :  { %v277_v24 = vmax.f32 %v276_v23, 1e-24 }
 0x347   :  { %323 = vrsqrt.f32 %v277_v24 }
 0x354   :  { %v324_v25 = vpop.eup %323 }
 0x355   :  { %v279_v26 = vmul.f32 %v324_v25, %v270_v20 }
 0x357   :  { %280 = vst [vmem:[#allocation8] sm:$0xff] %v279_v26 }
 0x358   :  { %376 = shalt.err (!%p373_p0)
}
 0x359   :  { %290 = dma.vmem_to_hbm [thread:$0]  %s288_s1, 128, %s446_s2, [#allocation5]  }
 0x35a   :  { %389 = dma.done.wait [#allocation5], 128  }
 0x35b   :  { %390 = vsyncadd [#allocation5], 4294967168 }
 0x35c   :  { %294 = vsyncpa [#allocation4], 1 }
 0x35d   :  { %295 = vsyncpa [#allocation7], 1 }
 0x35e   :  { %296 = vsyncpa [#allocation5], 1 }

</bundles_post_ra>
